<compile_context>
chip_gen: v5e
topology: v5e:2x2
jax: 0.10.0
libtpu: 0.0.40
codegen_flags: <defaults>
</compile_context>

<pallas_src>
import jax
import jax.numpy as jnp
from jax import lax
from jax.experimental import pallas as pl
from jax.experimental.pallas import tpu as pltpu


LANE = 128


def _round_up(v, m):
    return ((v + m - 1) // m) * m


# ---------------- fused Pallas kernel ----------------

def evaluator_fused_kernel(p1_ref, w1_ref, b1_ref, gcat_ref, rsel_ref,
                           jhead_ref, bhead_ref, o_ref):
    """One grid step == BT images.

    p1   : (BT, M1p, K1P) bf16  conv1 im2col patches (M1 padded to M1p, K
                                padded to K1P; pad entries are zero).
    w1   : (K1P, CP)      bf16  conv1 weights with eval-mode BN folded in.
    b1   : (1, CP)        f32   conv1 bias with BN folded in (0 in pad lanes).
    gcat : (CP, CP)       bf16  conv2 weights with the 1x1 head folded in:
                                gcat[c, 2t+j] = sum_o w2_t[c, o] * wl[o, j].
    rsel : (M1p, CP)      f32   folded avg-pool / tap-selection constants:
                                rsel[r, 2t+j] = count_t[r] / P2, zero on pad
                                rows and pad lanes.
    jhead: (CP, CP)       f32   0/1 matrix summing the 9 tap columns per class.
    bhead: (1, CP)        f32   [b2 @ wl + bl in lanes 0..1, -1e30 elsewhere].
    o    : (BT, CP)       f32   softmax probs in lanes 0..1, zeros elsewhere.
    """
    bt, m1p, k1p = p1_ref.shape
    cp = w1_ref.shape[-1]

    # conv1 (+ folded BN) + ReLU.  The (BT, M1p, K1P) -> (BT*M1p, K1P) merge
    # is tile-free because M1p % 8 == 0; y1 never touches HBM.
    p1 = p1_ref[...].reshape(bt * m1p, k1p)
    y1 = jnp.dot(p1, w1_ref[...], preferred_element_type=jnp.float32)
    y1 = jnp.maximum(y1 + b1_ref[...], 0.0)                     # (BT*M1p, CP)

    # conv2 + adaptive_avg_pool((1,1)) + 1x1 head, all folded:
    #   proj[b*M1p+r, 2t+j] = sum_c y1[b, r, c] * G_t[c, j]
    #   z    = proj * rsel      (pool counts / P2; kills padded rows)
    #   red[b, 2t+j] = sum_r z  (per-image pooled, per tap & class)
    #   logits[b, j] = sum_t red[b, 2t+j] + bhead[j]
    proj = jnp.dot(y1.astype(jnp.bfloat16), gcat_ref[...],
                   preferred_element_type=jnp.float32)           # (BT*M1p, CP)
    z = proj.reshape(bt, m1p, cp) * rsel_ref[...]                # bcast over BT
    red = jnp.sum(z, axis=1)                                     # (BT, CP)
    logits = jnp.dot(red, jhead_ref[...],
                     preferred_element_type=jnp.float32) + bhead_ref[...]

    # Softmax over the 2 real classes; pad lanes hold -1e30 so exp underflows
    # to exactly 0 and they contribute nothing.  Reciprocal -> EUP slot.
    m = jnp.max(logits, axis=-1, keepdims=True)
    e = jnp.exp(logits - m)
    soft = e * pl.reciprocal(jnp.sum(e, axis=-1, keepdims=True), approx=True)
    o_ref[...] = soft


# ---------------- host-side glue (plain JAX, tiny) ----------------

def _im2col(x_nhwc, ksize, stride):
    """Extract conv patches: returns ([N, Ho*Wo, kh*kw*C], Ho, Wo)."""
    N, H, W, C = x_nhwc.shape
    Ho = (H - ksize) // stride + 1
    Wo = (W - ksize) // stride + 1
    cols = []
    for dy in range(ksize):
        for dx in range(ksize):
            cols.append(x_nhwc[:, dy:dy + stride * (Ho - 1) + 1:stride,
                                  dx:dx + stride * (Wo - 1) + 1:stride, :])
    p = jnp.stack(cols, axis=3)                  # (N, Ho, Wo, kh*kw, C)
    return p.reshape(N, Ho * Wo, ksize * ksize * C), Ho, Wo


def _conv_weight_to_mat(w_oihw):
    """(Cout, Cin, kh, kw) -> (kh*kw*Cin, Cout), matching _im2col ordering."""
    cout = w_oihw.shape[0]
    return jnp.transpose(w_oihw, (2, 3, 1, 0)).reshape(-1, cout)


def _const_spec(shape):
    """Full-array block with a constant index_map (fetched once)."""
    zeros = (0,) * len(shape)
    return pl.BlockSpec(shape, lambda n, z=zeros: z)


def evaluator_probs(x_nchw, params, *, batch_tile=32, eps=1e-5):
    """Softmax probabilities (N, 2) of the Evaluator, via one fused kernel."""
    N = x_nchw.shape[0]
    C = params['w2'].shape[0]                       # n_feats
    CP = _round_up(max(C, LANE), LANE)              # lane-dense channel pad
    x = jnp.transpose(x_nchw, (0, 2, 3, 1))         # NCHW -> NHWC

    # ---- conv1 im2col patches; pad M1 -> mult of 8, K -> mult of 8, N -> BT.
    p1, H1, W1 = _im2col(x, 3, 2)                   # (N, M1, 27)
    M1 = H1 * W1
    K1 = p1.shape[-1]
    M1P = _round_up(M1, 8)
    K1P = _round_up(K1, 8)

    # Batch tile: multiple of 8 keeps every block (8,128)-tile friendly.  For
    # large N this also keeps grid length >= 2 so both v7x TensorCores work.
    BT = int(min(batch_tile, _round_up(N, 8)))
    NP = _round_up(N, BT)
    p1 = jnp.pad(p1, ((0, NP - N), (0, M1P - M1), (0, K1P - K1)))
    p1 = p1.astype(jnp.bfloat16)

    # ---- conv1 weights with eval-mode BN folded in (bf16 for the MXU).
    scale = params['gamma'] / jnp.sqrt(params['running_var'] + eps)
    w1f = _conv_weight_to_mat(params['w1']) * scale[None, :]
    b1f = (params['b1'] - params['running_mean']) * scale + params['beta']
    w1f = jnp.pad(w1f, ((0, K1P - K1), (0, CP - C))).astype(jnp.bfloat16)
    b1f = jnp.pad(b1f, (0, CP - C))[None, :].astype(jnp.float32)

    # ---- conv2 with the average pool and the 1x1 head folded in.
    H2 = (H1 - 3) // 2 + 1
    W2 = (W1 - 3) // 2 + 1
    P2 = H2 * W2
    # count_t[r]: how many conv2 output positions read y1 row r through tap t.
    tap = jnp.arange(9)
    pos = jnp.arange(P2)
    rows = ((2 * (pos // W2)[None, :] + (tap // 3)[:, None]) * W1
            + 2 * (pos % W2)[None, :] + (tap % 3)[:, None])          # (9, P2)
    counts = (rows[:, :, None] == jnp.arange(M1)[None, None, :]) \
        .astype(jnp.float32).sum(axis=1)                             # (9, M1)
    # rsel[r, 2t+j] = count_t[r] / P2.  Zero on the M1->M1P pad rows so the
    # (possibly nonzero) relu(b1) pad rows never contribute, and the divisor
    # is the true P2.
    rblock = jnp.repeat((counts / P2).T, 2, axis=1)                  # (M1, 18)
    rsel = jnp.pad(rblock, ((0, M1P - M1), (0, CP - 18))).astype(jnp.float32)

    # gcat[c, 2t+j] = sum_o w2_t[c, o] * wl[o, j]  (1x1 head folded in).
    w2_taps = jnp.transpose(params['w2'], (2, 3, 1, 0)).reshape(9, C, C)
    WL = params['wl'].reshape(2, C).T                                # (C, 2)
    G = jnp.einsum('tco,oj->tcj', w2_taps, WL)                       # (9, C, 2)
    gcols = jnp.transpose(G, (1, 0, 2)).reshape(C, 18)               # (C, 18)
    gcat = jnp.pad(gcols, ((0, CP - C), (0, CP - 18))).astype(jnp.bfloat16)

    # jhead sums the 9 tap columns per class; bhead = b2 @ wl + bl, -1e30 pad
    # so the softmax over 128 lanes sees exactly two finite logits.
    lane = jnp.arange(CP)
    jhead = ((lane[:, None] % 2 == lane[None, :]) & (lane[:, None] < 18)
             & (lane[None, :] < 2)).astype(jnp.float32)
    bh = params['b2'] @ WL + params['bl']                            # (2,)
    bhead = jnp.full((CP,), -1e30, jnp.float32).at[:2].set(bh)[None, :]

    # ---- single fused pallas_call, grid over batch tiles (parallel =>
    # shardable across the two v7x TensorCores when grid >= 2).
    grid = NP // BT
    flops = grid * (2 * BT * M1P * K1P * CP        # conv1
                    + 2 * BT * M1P * CP * CP       # folded conv2/head proj
                    + BT * M1P * CP                # pool-select multiply
                    + 2 * BT * CP * CP)            # tap collapse
    bytes_accessed = int(2 * (p1.size + w1f.size + gcat.size)
                         + 4 * (b1f.size + rsel.size + jhead.size + bhead.size)
                         + 4 * NP * CP)

    grid_spec = pltpu.PrefetchScalarGridSpec(
        num_scalar_prefetch=0,
        grid=(grid,),
        in_specs=[
            pl.BlockSpec((BT, M1P, K1P), lambda n: (n, 0, 0)),
            _const_spec(w1f.shape),
            _const_spec(b1f.shape),
            _const_spec(gcat.shape),
            _const_spec(rsel.shape),
            _const_spec(jhead.shape),
            _const_spec(bhead.shape),
        ],
        out_specs=pl.BlockSpec((BT, CP), lambda n: (n, 0)),
    )
    out = pl.pallas_call(
        evaluator_fused_kernel,
        out_shape=jax.ShapeDtypeStruct((NP, CP), jnp.float32),
        grid_spec=grid_spec,
        compiler_params=pltpu.CompilerParams(
            dimension_semantics=("parallel",)),
        cost_estimate=pl.CostEstimate(
            flops=int(flops), transcendentals=int(NP * CP),
            bytes_accessed=bytes_accessed),
    )(p1, w1f, b1f, gcat, rsel, jhead, bhead)
    return out[:N, :2]


def evaluator_forward(x_nchw, params, eva_threshold=0.5):
    """Eval-mode branch of Evaluator.forward: returns (action, None).

    Faithful to the PyTorch code: `softmax[1]` indexes *row 1* of the (N, 2)
    softmax output (for N >= 2), so `action` is a length-2 vector.
    """
    soft = evaluator_probs(x_nchw, params)
    action = jnp.where(soft[1] > eva_threshold, 1, 0)
    # TODO(synk): training-mode branch (Categorical sampling + returning the
    # distribution `m`) has no clean Pallas equivalent.
    return action, None


# ---------------- pure-JAX f32 reference for verification ----------------

def reference_forward(x, params):
    dn = ('NCHW', 'OIHW', 'NCHW')
    y = lax.conv_general_dilated(x, params['w1'], (2, 2), 'VALID',
                                 dimension_numbers=dn)
    y = y + params['b1'][None, :, None, None]
    eps = 1e-5
    y = (y - params['running_mean'][None, :, None, None]) / \
        jnp.sqrt(params['running_var'][None, :, None, None] + eps)
    y = y * params['gamma'][None, :, None, None] + params['beta'][None, :, None, None]
    y = jnp.maximum(y, 0.0)
    y = lax.conv_general_dilated(y, params['w2'], (2, 2), 'VALID',
                                 dimension_numbers=dn)
    y = y + params['b2'][None, :, None, None]
    pooled = jnp.mean(y, axis=(2, 3))                              # (N, C)
    logits = pooled @ params['wl'].reshape(2, -1).T + params['bl'][None, :]
    soft = jax.nn.softmax(logits, axis=-1)
    action = jnp.where(soft[1] > 0.5, 1, 0)
    return action, soft


def init_params(n_feats, key):
    ks = jax.random.split(key, 10)
    return {
        'w1': 0.1 * jax.random.normal(ks[0], (n_feats, 3, 3, 3), jnp.float32),
        'b1': 0.1 * jax.random.normal(ks[1], (n_feats,), jnp.float32),
        'gamma': 1.0 + 0.1 * jax.random.normal(ks[2], (n_feats,), jnp.float32),
        'beta': 0.1 * jax.random.normal(ks[3], (n_feats,), jnp.float32),
        'running_mean': 0.1 * jax.random.normal(ks[4], (n_feats,), jnp.float32),
        'running_var': jnp.abs(1.0 + 0.1 * jax.random.normal(ks[5], (n_feats,), jnp.float32)),
        'w2': 0.1 * jax.random.normal(ks[6], (n_feats, n_feats, 3, 3), jnp.float32),
        'b2': 0.1 * jax.random.normal(ks[7], (n_feats,), jnp.float32),
        'wl': 0.1 * jax.random.normal(ks[8], (2, n_feats, 1, 1), jnp.float32),
        'bl': 0.1 * jax.random.normal(ks[9], (2,), jnp.float32),
    }


if __name__ == "__main__":
    n_feats = 16
    key = jax.random.PRNGKey(0)
    kx, kp = jax.random.split(key)

    x = jax.random.normal(kx, (2, 3, 16, 16), jnp.float32)   # NCHW input
    params = init_params(n_feats, kp)

    soft = evaluator_probs(x, params)
    action, m = evaluator_forward(x, params)
    jax.block_until_ready((soft, action))

    ref_action, ref_soft = reference_forward(x, params)
    assert soft.shape == ref_soft.shape, (soft.shape, ref_soft.shape)
    # bf16 MXU operands + approx reciprocal -> compare with a loose tolerance.
    assert jnp.allclose(soft, ref_soft, atol=3e-2), (soft, ref_soft)
    assert m is None
    # Action must be consistent with the kernel's own probabilities; compare
    # against the f32 reference only when it is not borderline at 0.5 (bf16
    # rounding could legitimately flip a borderline threshold).
    assert jnp.array_equal(action, jnp.where(soft[1] > 0.5, 1, 0))
    if bool(jnp.all(jnp.abs(ref_soft[1] - 0.5) > 0.03)):
        assert jnp.array_equal(action, ref_action), (action, ref_action)

    print("KERNEL_OK")
</pallas_src>

<mosaic_0001>
module attributes {stable_mosaic.version = 11 : i64} {
  func.func @evaluator_fused_kernel(%arg0: i32, %arg1: memref<8x56x32xbf16, #tpu.memory_space<vmem>>, %arg2: memref<32x128xbf16, #tpu.memory_space<vmem>>, %arg3: memref<1x128xf32, #tpu.memory_space<vmem>>, %arg4: memref<128x128xbf16, #tpu.memory_space<vmem>>, %arg5: memref<56x128xf32, #tpu.memory_space<vmem>>, %arg6: memref<128x128xf32, #tpu.memory_space<vmem>>, %arg7: memref<1x128xf32, #tpu.memory_space<vmem>>, %arg8: memref<8x128xf32, #tpu.memory_space<vmem>>) attributes {dimension_semantics = [#tpu.dimension_semantics<parallel>], iteration_bounds = array<i64: 1>, scalar_prefetch = 0 : i64, scratch_operands = 0 : i64, tpu.core_type = #tpu.core_type<tc>, window_params = [{transform_indices = @transform_0, window_bounds = array<i64: 8, 56, 32>}, {pipeline_mode = #tpu.pipeline_mode<synchronous>, transform_indices = @transform_1, window_bounds = array<i64: 32, 128>}, {pipeline_mode = #tpu.pipeline_mode<synchronous>, transform_indices = @transform_2, window_bounds = array<i64: 1, 128>}, {pipeline_mode = #tpu.pipeline_mode<synchronous>, transform_indices = @transform_3, window_bounds = array<i64: 128, 128>}, {pipeline_mode = #tpu.pipeline_mode<synchronous>, transform_indices = @transform_4, window_bounds = array<i64: 56, 128>}, {pipeline_mode = #tpu.pipeline_mode<synchronous>, transform_indices = @transform_5, window_bounds = array<i64: 128, 128>}, {pipeline_mode = #tpu.pipeline_mode<synchronous>, transform_indices = @transform_6, window_bounds = array<i64: 1, 128>}, {transform_indices = @transform_7, window_bounds = array<i64: 8, 128>}]} {
    %c0 = arith.constant 0 : index
    %c0_0 = arith.constant 0 : index
    %c0_1 = arith.constant 0 : index
    %0 = vector.load %arg1[%c0, %c0_0, %c0_1] : memref<8x56x32xbf16, #tpu.memory_space<vmem>>, vector<8x56x32xbf16>
    %1 = vector.shape_cast %0 : vector<8x56x32xbf16> to vector<448x32xbf16>
    %c0_2 = arith.constant 0 : index
    %c0_3 = arith.constant 0 : index
    %2 = vector.load %arg2[%c0_2, %c0_3] : memref<32x128xbf16, #tpu.memory_space<vmem>>, vector<32x128xbf16>
    %cst = arith.constant dense<0.000000e+00> : vector<448x128xf32>
    %3 = tpu.matmul %1, %2, %cst {dimension_numbers = #tpu.dot_dimension_numbers<[1], [0], [0], [1], [0, 0, 1, 1], [], []>} : vector<448x32xbf16>, vector<32x128xbf16>, vector<448x128xf32> -> vector<448x128xf32>
    %c0_4 = arith.constant 0 : index
    %c0_5 = arith.constant 0 : index
    %4 = vector.load %arg3[%c0_4, %c0_5] : memref<1x128xf32, #tpu.memory_space<vmem>>, vector<1x128xf32>
    %5 = vector.broadcast %4 : vector<1x128xf32> to vector<448x128xf32>
    %6 = arith.addf %3, %5 : vector<448x128xf32>
    %cst_6 = arith.constant 0.000000e+00 : f32
    %7 = vector.broadcast %cst_6 : f32 to vector<448x128xf32>
    %8 = arith.maximumf %6, %7 : vector<448x128xf32>
    %9 = arith.truncf %8 : vector<448x128xf32> to vector<448x128xbf16>
    %c0_7 = arith.constant 0 : index
    %c0_8 = arith.constant 0 : index
    %10 = vector.load %arg4[%c0_7, %c0_8] : memref<128x128xbf16, #tpu.memory_space<vmem>>, vector<128x128xbf16>
    %cst_9 = arith.constant dense<0.000000e+00> : vector<448x128xf32>
    %11 = tpu.matmul %9, %10, %cst_9 {dimension_numbers = #tpu.dot_dimension_numbers<[1], [0], [0], [1], [0, 0, 1, 1], [], []>} : vector<448x128xbf16>, vector<128x128xbf16>, vector<448x128xf32> -> vector<448x128xf32>
    %12 = vector.shape_cast %11 : vector<448x128xf32> to vector<8x56x128xf32>
    %c0_10 = arith.constant 0 : index
    %c0_11 = arith.constant 0 : index
    %13 = vector.load %arg5[%c0_10, %c0_11] : memref<56x128xf32, #tpu.memory_space<vmem>>, vector<56x128xf32>
    %14 = vector.shape_cast %13 : vector<56x128xf32> to vector<1x56x128xf32>
    %15 = vector.broadcast %14 : vector<1x56x128xf32> to vector<8x56x128xf32>
    %16 = arith.mulf %12, %15 : vector<8x56x128xf32>
    %cst_12 = arith.constant dense<0.000000e+00> : vector<8x128xf32>
    %17 = vector.multi_reduction <add>, %16, %cst_12 [1] : vector<8x56x128xf32> to vector<8x128xf32>
    %c0_13 = arith.constant 0 : index
    %c0_14 = arith.constant 0 : index
    %18 = vector.load %arg6[%c0_13, %c0_14] : memref<128x128xf32, #tpu.memory_space<vmem>>, vector<128x128xf32>
    %cst_15 = arith.constant dense<0.000000e+00> : vector<8x128xf32>
    %19 = tpu.matmul %17, %18, %cst_15 {dimension_numbers = #tpu.dot_dimension_numbers<[1], [0], [0], [1], [0, 0, 1, 1], [], []>} : vector<8x128xf32>, vector<128x128xf32>, vector<8x128xf32> -> vector<8x128xf32>
    %c0_16 = arith.constant 0 : index
    %c0_17 = arith.constant 0 : index
    %20 = vector.load %arg7[%c0_16, %c0_17] : memref<1x128xf32, #tpu.memory_space<vmem>>, vector<1x128xf32>
    %21 = vector.broadcast %20 : vector<1x128xf32> to vector<8x128xf32>
    %22 = arith.addf %19, %21 : vector<8x128xf32>
    %cst_18 = arith.constant dense<0xFF800000> : vector<8xf32>
    %23 = vector.multi_reduction <maximumf>, %22, %cst_18 [1] : vector<8x128xf32> to vector<8xf32>
    %24 = vector.shape_cast %23 : vector<8xf32> to vector<8x1xf32>
    %25 = vector.broadcast %24 : vector<8x1xf32> to vector<8x128xf32>
    %26 = arith.subf %22, %25 : vector<8x128xf32>
    %27 = math.exp %26 : vector<8x128xf32>
    %cst_19 = arith.constant dense<0.000000e+00> : vector<8xf32>
    %28 = vector.multi_reduction <add>, %27, %cst_19 [1] : vector<8x128xf32> to vector<8xf32>
    %29 = vector.shape_cast %28 : vector<8xf32> to vector<8x1xf32>
    %30 = tpu.reciprocal %29 {approx = true} : vector<8x1xf32> -> vector<8x1xf32>
    %31 = vector.broadcast %30 : vector<8x1xf32> to vector<8x128xf32>
    %32 = arith.mulf %27, %31 : vector<8x128xf32>
    %c0_20 = arith.constant 0 : index
    %c0_21 = arith.constant 0 : index
    %33 = vector.load %arg8[%c0_20, %c0_21] : memref<8x128xf32, #tpu.memory_space<vmem>>, vector<8x128xf32>
    tpu.vector_store %arg8[%c0_20, %c0_21], %32 {strides = array<i32>} : memref<8x128xf32, #tpu.memory_space<vmem>>, vector<8x128xf32>,
    return
  }
  func.func @transform_0(%arg0: i32) -> (i32, i32, i32) {
    %c0_i32 = arith.constant 0 : i32
    %c0_i32_0 = arith.constant 0 : i32
    %c0_i32_1 = arith.constant 0 : i32
    return %arg0, %c0_i32, %c0_i32_0 : i32, i32, i32
  }
  func.func @transform_1(%arg0: i32) -> (i32, i32) {
    %c0_i32 = arith.constant 0 : i32
    %c0_i32_0 = arith.constant 0 : i32
    %c0_i32_1 = arith.constant 0 : i32
    return %c0_i32, %c0_i32_0 : i32, i32
  }
  func.func @transform_2(%arg0: i32) -> (i32, i32) {
    %c0_i32 = arith.constant 0 : i32
    %c0_i32_0 = arith.constant 0 : i32
    %c0_i32_1 = arith.constant 0 : i32
    return %c0_i32, %c0_i32_0 : i32, i32
  }
  func.func @transform_3(%arg0: i32) -> (i32, i32) {
    %c0_i32 = arith.constant 0 : i32
    %c0_i32_0 = arith.constant 0 : i32
    %c0_i32_1 = arith.constant 0 : i32
    return %c0_i32, %c0_i32_0 : i32, i32
  }
  func.func @transform_4(%arg0: i32) -> (i32, i32) {
    %c0_i32 = arith.constant 0 : i32
    %c0_i32_0 = arith.constant 0 : i32
    %c0_i32_1 = arith.constant 0 : i32
    return %c0_i32, %c0_i32_0 : i32, i32
  }
  func.func @transform_5(%arg0: i32) -> (i32, i32) {
    %c0_i32 = arith.constant 0 : i32
    %c0_i32_0 = arith.constant 0 : i32
    %c0_i32_1 = arith.constant 0 : i32
    return %c0_i32, %c0_i32_0 : i32, i32
  }
  func.func @transform_6(%arg0: i32) -> (i32, i32) {
    %c0_i32 = arith.constant 0 : i32
    %c0_i32_0 = arith.constant 0 : i32
    %c0_i32_1 = arith.constant 0 : i32
    return %c0_i32, %c0_i32_0 : i32, i32
  }
  func.func @transform_7(%arg0: i32) -> (i32, i32) {
    %c0_i32 = arith.constant 0 : i32
    %c0_i32_0 = arith.constant 0 : i32
    return %arg0, %c0_i32 : i32, i32
  }
}

</mosaic_0001>

<bundles_post_ra>
// kernel: tpu_custom_call.1
= control target key start
LH: loop header
LB: loop body
LE: loop exit
PB: predicated region body
PF: predicated region fallthrough
CT: control target
= control target key end

     0   :  { %s1676_s0 = inlined_call_operand.vmem [shape: bf16[8,56,32], index: 0, kind: input, shape index: {}]   ;;  %s1677_s1 = inlined_call_operand.vmem [shape: bf16[32,128], index: 1, kind: input, shape index: {}]   ;;  %s1678_s2 = inlined_call_operand.vmem [shape: f32[1,128], index: 2, kind: input, shape index: {}]   ;;  %s1679_s3 = inlined_call_operand.vmem [shape: bf16[128,128], index: 3, kind: input, shape index: {}]   ;;  %s1680_s4 = inlined_call_operand.vmem [shape: f32[56,128], index: 4, kind: input, shape index: {}]   ;;  %s1681_s5 = inlined_call_operand.vmem [shape: f32[128,128], index: 5, kind: input, shape index: {}]   ;;  %s1682_s6 = inlined_call_operand.vmem [shape: f32[1,128], index: 6, kind: input, shape index: {}]   ;;  %s1683_s7 = inlined_call_operand.hbm [shape: f32[8,128], index: 7, kind: output, shape index: {}]  }
   0x1   :  { %v1232_v0 = vld [vmem:[%s1677_s1 + $0x8] sm:$0xff]  ;;  %v1231_v1 = vld [vmem:[%s1677_s1] sm:$0xff] }
   0x2   :  { %335 = vmatpush.bf16.msra.mxu0 %v1232_v0  ;;  %1241 = vmatpush.bf16.msra.mxu2 %v1232_v0 }
   0x3   :  { %12 = vsyncpa [#allocation3], 0  ;;  %v1203_v2 = vld [vmem:[%s1676_s0] sm:$0xff]  ;;  %vm244_vm0 = vcmask 261120   ;;  %v1204_v3 = vld [vmem:[%s1676_s0 + $0x8] sm:$0xff]  ;;  %vm962_vm1 = vcmask 1041409  }
   0x4   :  { %v1205_v4 = vld [vmem:[%s1676_s0 + $0x10] sm:$0xff]  ;;  %v1206_v5 = vld [vmem:[%s1676_s0 + $0x18] sm:$0xff]  ;;  %v1207_v6 = vld [vmem:[%s1676_s0 + $0x20] sm:$0xff]  ;;  %vm964_vm2 = vcmask 1042434   ;;  %vm966_vm3 = vcmask 1043459   ;;  %vm968_vm4 = vcmask 1044484  }
   0x5   :  { %v1240_v7 = vld [vmem:[%s1679_s3 + $0x38] sm:$0xff]  ;;  %v1208_v8 = vld [vmem:[%s1676_s0 + $0x28] sm:$0xff]  ;;  %v1239_v9 = vld [vmem:[%s1679_s3 + $0x30] sm:$0xff]  ;;  %vm970_vm5 = vcmask 1045509   ;;  %vm972_vm6 = vcmask 1046534   ;;  %vm974_vm7 = vcmask 1047559  }
   0x6   :  { %336 = vmatpush.bf16.msra.mxu0 %v1231_v1  ;;  %1242 = vmatpush.bf16.msra.mxu2 %v1231_v1  ;;  %v1238_v10 = vld [vmem:[%s1679_s3 + $0x28] sm:$0xff]  ;;  %v1237_v11 = vld [vmem:[%s1679_s3 + $0x20] sm:$0xff]  ;;  %v1236_v12 = vld [vmem:[%s1679_s3 + $0x18] sm:$0xff]  ;;  %s1284_s17 = smov [#allocation2]   ;;  %s1014_s21 = sshll.u32 %s1683_s7, 4  ;;  %s1015_s21 = int_to_ptr.hbm [resolvable:$true] %s1014_s21 }
   0x7   :  { %626 = vmatpush.bf16.msra.mxu1 %v1240_v7  ;;  %1243 = vmatpush.bf16.msra.mxu3 %v1240_v7  ;;  %v1209_v13 = vld [vmem:[%s1676_s0 + $0x30] sm:$0xff]  ;;  %v1234_v15 = vld [vmem:[%s1679_s3 + $0x8] sm:$0xff]  ;;  %v1233_v16 = vld [vmem:[%s1679_s3] sm:$0xff]  ;;  %s1012_s18 = sshll.u32 %s1284_s17, 4  ;;  %s1013_s18 = int_to_ptr.vmem [resolvable:$true] %s1012_s18 }
   0x8   :  { %v1235_v14 = vld [vmem:[%s1679_s3 + $0x10] sm:$0xff]  ;;  %v1210_v17 = vld [vmem:[%s1676_s0 + $0x38] sm:$0xff]  ;;  %v1211_v18 = vld [vmem:[%s1676_s0 + $0x40] sm:$0xff] }
   0x9   :  { %1143 = vmatmul.msk.bf16.vlgmr.msra.gmra.mxu0 %vm244_vm0, %v1203_v2  ;;  %v1393_v20 = vld [vmem:[%s1678_s2] ss:$0 sm:$0xff]  ;;  %v1212_v27 = vld [vmem:[%s1676_s0 + $0x48] sm:$0xff]  ;;  %v1213_v35 = vld [vmem:[%s1676_s0 + $0x50] sm:$0xff] }
   0xa   :  { %v1214_v43 = vld [vmem:[%s1676_s0 + $0x58] sm:$0xff]  ;;  %v1215_v51 = vld [vmem:[%s1676_s0 + $0x60] sm:$0xff]  ;;  %v1216_v60 = vld [vmem:[%s1676_s0 + $0x68] sm:$0xff] }
   0xb   :  { %627 = vmatpush.bf16.msra.mxu1 %v1239_v9  ;;  %1244 = vmatpush.bf16.msra.mxu3 %v1239_v9  ;;  %v1218_v53 = vld [vmem:[%s1676_s0 + $0x78] sm:$0xff]  ;;  %v1219_v62 = vld [vmem:[%s1676_s0 + $0x80] sm:$0xff]  ;;  %v1220_v7 = vld [vmem:[%s1676_s0 + $0x88] sm:$0xff] }
   0xc   :  { %1158 = vmatmul.msk.bf16.vlgmr.msra.gmra.mxu2 %vm244_vm0, %v1218_v53 }
   0xf   :  { %628 = vmatpush.bf16.msra.mxu1 %v1238_v10  ;;  %1245 = vmatpush.bf16.msra.mxu3 %v1238_v10 }
  0x13   :  { %629 = vmatpush.bf16.msra.mxu1 %v1237_v11  ;;  %1246 = vmatpush.bf16.msra.mxu3 %v1237_v11 }
  0x17   :  { %630 = vmatpush.bf16.msra.mxu1 %v1236_v12  ;;  %1247 = vmatpush.bf16.msra.mxu3 %v1236_v12 }
  0x19   :  { %1144 = vmatmul.msk.bf16.gmra.mxu0 %vm244_vm0, %v1204_v3 }
  0x1b   :  { %631 = vmatpush.bf16.msra.mxu1 %v1235_v14  ;;  %1248 = vmatpush.bf16.msra.mxu3 %v1235_v14 }
  0x1c   :  { %1159 = vmatmul.msk.bf16.gmra.mxu2 %vm244_vm0, %v1219_v62 }
  0x1f   :  { %632 = vmatpush.bf16.msra.mxu1 %v1234_v15  ;;  %1249 = vmatpush.bf16.msra.mxu3 %v1234_v15  ;;  %v1221_v15 = vld [vmem:[%s1676_s0 + $0x90] sm:$0xff] }
  0x23   :  { %633 = vmatpush.bf16.msra.mxu1 %v1233_v16  ;;  %1250 = vmatpush.bf16.msra.mxu3 %v1233_v16 }
  0x29   :  { %1145 = vmatmul.msk.bf16.gmra.mxu0 %vm244_vm0, %v1205_v4 }
  0x2c   :  { %1160 = vmatmul.msk.bf16.gmra.mxu2 %vm244_vm0, %v1220_v7 }
  0x39   :  { %1146 = vmatmul.msk.bf16.gmra.mxu0 %vm244_vm0, %v1206_v5  ;;  %v1217_v5 = vld [vmem:[%s1676_s0 + $0x70] sm:$0xff] }
  0x3c   :  { %1161 = vmatmul.msk.bf16.gmra.mxu2 %vm244_vm0, %v1221_v15 }
  0x49   :  { %1147 = vmatmul.msk.bf16.gmra.mxu0 %vm244_vm0, %v1207_v6 }
  0x59   :  { %1148 = vmatmul.msk.bf16.gmra.mxu0 %vm244_vm0, %v1208_v8 }
  0x69   :  { %1149 = vmatmul.msk.bf16.gmra.mxu0 %vm244_vm0, %v1209_v13 }
  0x79   :  { %1150 = vmatmul.msk.bf16.gmra.mxu0 %vm244_vm0, %v1210_v17 }
  0x86   :  { %v338_v19 = vpop.f32.mrf.mxu0 }
  0x87   :  { %v339_v21 = vadd.f32 %v1393_v20, %v338_v19 }
  0x89   :  { %1151 = vmatmul.msk.bf16.gmra.mxu0 %vm244_vm0, %v1211_v18  ;;  %v478_v24 = vmax.f32 %v339_v21, 0.0 }
  0x8e   :  { %v340_v22 = vpop.f32.mrf.mxu0 }
  0x8f   :  { %v341_v23 = vadd.f32 %v1393_v20, %v340_v22 }
  0x91   :  { %v479_v25 = vmax.f32 %v341_v23, 0.0 }
  0x93   :  { %v534_v26 = vpack.c.bf16 %v479_v25, %v478_v24  ;;  %v1222_v24 = vld [vmem:[%s1676_s0 + $0x98] sm:$0xff] }
  0x94   :  { %1162 = vmatmul.msk.bf16.gmra.mxu2 %vm244_vm0, %v1222_v24  ;;  %v413_v24 = vpop.f32.mrf.mxu2 }
  0x95   :  { %634 = vmatmul.bf16.vlgmr.msra.gmra.mxu1 %v534_v26 }
  0x96   :  { %v343_v28 = vpop.f32.mrf.mxu0 }
  0x97   :  { %v344_v29 = vadd.f32 %v1393_v20, %v343_v28 }
  0x99   :  { %1152 = vmatmul.msk.bf16.gmra.mxu0 %vm244_vm0, %v1212_v27  ;;  %v480_v32 = vmax.f32 %v344_v29, 0.0 }
  0x9e   :  { %v345_v30 = vpop.f32.mrf.mxu0 }
  0x9f   :  { %v346_v31 = vadd.f32 %v1393_v20, %v345_v30 }
  0xa1   :  { %v481_v33 = vmax.f32 %v346_v31, 0.0 }
  0xa3   :  { %v535_v34 = vpack.c.bf16 %v481_v33, %v480_v32  ;;  %v1461_v33 = vld [vmem:[%s1680_s4] sm:$0xff] }
  0xa5   :  { %639 = vmatmul.bf16.gmra.mxu1 %v535_v34  ;;  %v1466_v34 = vld [vmem:[%s1680_s4 + $0x8] sm:$0xff] }
  0xa6   :  { %v348_v36 = vpop.f32.mrf.mxu0 }
  0xa7   :  { %v349_v37 = vadd.f32 %v1393_v20, %v348_v36 }
  0xa9   :  { %1153 = vmatmul.msk.bf16.gmra.mxu0 %vm244_vm0, %v1213_v35  ;;  %v482_v40 = vmax.f32 %v349_v37, 0.0  ;;  %v1223_v35 = vld [vmem:[%s1676_s0 + $0xa0] sm:$0xff] }
  0xaa   :  { %1163 = vmatmul.msk.bf16.gmra.mxu2 %vm244_vm0, %v1223_v35 }
  0xae   :  { %v350_v38 = vpop.f32.mrf.mxu0 }
  0xaf   :  { %v351_v39 = vadd.f32 %v1393_v20, %v350_v38 }
  0xb1   :  { %v483_v41 = vmax.f32 %v351_v39, 0.0 }
  0xb3   :  { %v536_v42 = vpack.c.bf16 %v483_v41, %v482_v40 }
  0xb5   :  { %644 = vmatmul.bf16.gmra.mxu1 %v536_v42 }
  0xb6   :  { %v353_v44 = vpop.f32.mrf.mxu0 }
  0xb7   :  { %v354_v45 = vadd.f32 %v1393_v20, %v353_v44 }
  0xb9   :  { %1154 = vmatmul.msk.bf16.gmra.mxu0 %vm244_vm0, %v1214_v43  ;;  %v484_v48 = vmax.f32 %v354_v45, 0.0  ;;  %v1479_v43 = vld [vmem:[%s1680_s4 + $0x10] sm:$0xff] }
  0xbe   :  { %v355_v46 = vpop.f32.mrf.mxu0 }
  0xbf   :  { %v356_v47 = vadd.f32 %v1393_v20, %v355_v46 }
  0xc1   :  { %v485_v49 = vmax.f32 %v356_v47, 0.0 }
  0xc3   :  { %v537_v50 = vpack.c.bf16 %v485_v49, %v484_v48 }
  0xc5   :  { %649 = vmatmul.bf16.gmra.mxu1 %v537_v50 }
  0xc6   :  { %v358_v52 = vpop.f32.mrf.mxu0 }
  0xc7   :  { %v359_v54 = vadd.f32 %v1393_v20, %v358_v52  ;;  %v1224_v52 = vld [vmem:[%s1676_s0 + $0xa8] sm:$0xff] }
  0xc8   :  { %1164 = vmatmul.msk.bf16.gmra.mxu2 %vm244_vm0, %v1224_v52 }
  0xc9   :  { %1155 = vmatmul.msk.bf16.gmra.mxu0 %vm244_vm0, %v1215_v51  ;;  %v486_v57 = vmax.f32 %v359_v54, 0.0  ;;  %v1485_v51 = vld [vmem:[%s1680_s4 + $0x18] sm:$0xff] }
  0xce   :  { %v360_v55 = vpop.f32.mrf.mxu0 }
  0xcf   :  { %v361_v56 = vadd.f32 %v1393_v20, %v360_v55 }
  0xd1   :  { %v487_v58 = vmax.f32 %v361_v56, 0.0 }
  0xd3   :  { %v538_v59 = vpack.c.bf16 %v487_v58, %v486_v57 }
  0xd5   :  { %654 = vmatmul.bf16.gmra.mxu1 %v538_v59  ;;  %v1497_v59 = vld [vmem:[%s1680_s4 + $0x20] sm:$0xff] }
  0xd6   :  { %v363_v61 = vpop.f32.mrf.mxu0 }
  0xd7   :  { %v364_v63 = vadd.f32 %v1393_v20, %v363_v61 }
  0xd9   :  { %1156 = vmatmul.msk.bf16.gmra.mxu0 %vm244_vm0, %v1216_v60  ;;  %v488_v2 = vmax.f32 %v364_v63, 0.0 }
  0xde   :  { %v365_v0 = vpop.f32.mrf.mxu0 }
  0xdf   :  { %v366_v1 = vadd.f32 %v1393_v20, %v365_v0 }
  0xe1   :  { %v489_v3 = vmax.f32 %v366_v1, 0.0 }
  0xe3   :  { %v539_v4 = vpack.c.bf16 %v489_v3, %v488_v2  ;;  %v1503_v3 = vld [vmem:[%s1680_s4 + $0x28] sm:$0xff] }
  0xe5   :  { %659 = vmatmul.bf16.gmra.mxu1 %v539_v4  ;;  %v1225_v4 = vld [vmem:[%s1676_s0 + $0xb0] sm:$0xff] }
  0xe6   :  { %v368_v6 = vpop.f32.mrf.mxu0  ;;  %1165 = vmatmul.msk.bf16.gmra.mxu2 %vm244_vm0, %v1225_v4 }
  0xe7   :  { %v369_v8 = vadd.f32 %v1393_v20, %v368_v6 }
  0xe9   :  { %1157 = vmatmul.msk.bf16.gmra.mxu0 %vm244_vm0, %v1217_v5  ;;  %v490_v11 = vmax.f32 %v369_v8, 0.0 }
  0xee   :  { %v370_v9 = vpop.f32.mrf.mxu0 }
  0xef   :  { %v371_v10 = vadd.f32 %v1393_v20, %v370_v9 }
  0xf1   :  { %v491_v12 = vmax.f32 %v371_v10, 0.0 }
  0xf3   :  { %v540_v13 = vpack.c.bf16 %v491_v12, %v490_v11  ;;  %v1515_v11 = vld [vmem:[%s1680_s4 + $0x30] sm:$0xff] }
  0xf5   :  { %664 = vmatmul.bf16.gmra.mxu1 %v540_v13 }
  0xf6   :  { %v373_v14 = vpop.f32.mrf.mxu0 }
  0xf7   :  { %v374_v16 = vadd.f32 %v1393_v20, %v373_v14 }
  0xf9   :  { %v492_v19 = vmax.f32 %v374_v16, 0.0 }
  0xfe   :  { %v375_v17 = vpop.f32.mrf.mxu0 }
  0xff   :  { %v376_v18 = vadd.f32 %v1393_v20, %v375_v17 }
 0x101   :  { %v493_v21 = vmax.f32 %v376_v18, 0.0 }
 0x103   :  { %v541_v22 = vpack.c.bf16 %v493_v21, %v492_v19  ;;  %v1226_v19 = vld [vmem:[%s1676_s0 + $0xb8] sm:$0xff] }
 0x104   :  { %1166 = vmatmul.msk.bf16.gmra.mxu2 %vm244_vm0, %v1226_v19 }
 0x105   :  { %669 = vmatmul.bf16.gmra.mxu1 %v541_v22 }
 0x106   :  { %v378_v23 = vpop.f32.mrf.mxu0 }
 0x107   :  { %v379_v25 = vadd.f32 %v1393_v20, %v378_v23 }
 0x109   :  { %v494_v28 = vmax.f32 %v379_v25, 0.0 }
 0x10e   :  { %v380_v26 = vpop.f32.mrf.mxu0 }
 0x10f   :  { %v381_v27 = vadd.f32 %v1393_v20, %v380_v26 }
 0x111   :  { %v495_v29 = vmax.f32 %v381_v27, 0.0 }
 0x112   :  { %v635_v30 = vpop.f32.mrf.mxu1 }
 0x113   :  { %v542_v31 = vpack.c.bf16 %v495_v29, %v494_v28  ;;  %v782_v37 = vmul.f32 %v1461_v33, %v635_v30 }
 0x115   :  { %674 = vmatmul.bf16.gmra.mxu1 %v542_v31 }
 0x116   :  { %v383_v32 = vpop.f32.mrf.mxu0 }
 0x117   :  { %v384_v39 = vadd.f32 %v1393_v20, %v383_v32 }
 0x119   :  { %v496_v44 = vmax.f32 %v384_v39, 0.0 }
 0x11a   :  { %v637_v36 = vpop.f32.mrf.mxu1 }
 0x11b   :  { %v783_v38 = vmul.f32 %v1466_v34, %v637_v36  ;;  %v415_v36 = vpop.f32.mrf.mxu2 }
 0x11d   :  { %v838_v40 = vadd.f32 %v783_v38, %v782_v37  ;;  %v1227_v37 = vld [vmem:[%s1676_s0 + $0xc0] sm:$0xff] }
 0x11e   :  { %v385_v41 = vpop.f32.mrf.mxu0  ;;  %1167 = vmatmul.msk.bf16.gmra.mxu2 %vm244_vm0, %v1227_v37 }
 0x11f   :  { %v386_v42 = vadd.f32 %v1393_v20, %v385_v41 }
 0x121   :  { %v497_v45 = vmax.f32 %v386_v42, 0.0 }
 0x122   :  { %v640_v46 = vpop.f32.mrf.mxu1 }
 0x123   :  { %v784_v47 = vmul.f32 %v1479_v43, %v640_v46  ;;  %v543_v48 = vpack.c.bf16 %v497_v45, %v496_v44  ;;  %v418_v44 = vpop.f32.mrf.mxu2 }
 0x124   :  { %v419_v37 = vadd.f32 %v1393_v20, %v418_v44 }
 0x125   :  { %v839_v49 = vadd.f32 %v838_v40, %v784_v47  ;;  %679 = vmatmul.bf16.gmra.mxu1 %v543_v48 }
 0x126   :  { %v388_v50 = vpop.f32.mrf.mxu0 }
 0x127   :  { %v389_v55 = vadd.f32 %v1393_v20, %v388_v50 }
 0x129   :  { %v498_v60 = vmax.f32 %v389_v55, 0.0  ;;  %v1228_v55 = vld [vmem:[%s1676_s0 + $0xc8] sm:$0xff] }
 0x12a   :  { %v642_v53 = vpop.f32.mrf.mxu1 }
 0x12b   :  { %v785_v54 = vmul.f32 %v1485_v51, %v642_v53 }
 0x12d   :  { %v840_v56 = vadd.f32 %v839_v49, %v785_v54  ;;  %v420_v54 = vpop.f32.mrf.mxu2 }
 0x12e   :  { %v390_v57 = vpop.f32.mrf.mxu0  ;;  %1168 = vmatmul.msk.bf16.gmra.mxu2 %vm244_vm0, %v1228_v55 }
 0x12f   :  { %v391_v58 = vadd.f32 %v1393_v20, %v390_v57 }
 0x131   :  { %v499_v61 = vmax.f32 %v391_v58, 0.0 }
 0x132   :  { %v645_v62 = vpop.f32.mrf.mxu1 }
 0x133   :  { %v786_v63 = vmul.f32 %v1497_v59, %v645_v62  ;;  %v544_v0 = vpack.c.bf16 %v499_v61, %v498_v60 }
 0x135   :  { %v841_v1 = vadd.f32 %v840_v56, %v786_v63  ;;  %684 = vmatmul.bf16.gmra.mxu1 %v544_v0  ;;  %v423_v62 = vpop.f32.mrf.mxu2 }
 0x136   :  { %v393_v2 = vpop.f32.mrf.mxu0 }
 0x137   :  { %v394_v7 = vadd.f32 %v1393_v20, %v393_v2 }
 0x139   :  { %v500_v12 = vmax.f32 %v394_v7, 0.0 }
 0x13a   :  { %v647_v5 = vpop.f32.mrf.mxu1 }
 0x13b   :  { %v787_v6 = vmul.f32 %v1503_v3, %v647_v5 }
 0x13d   :  { %v842_v8 = vadd.f32 %v841_v1, %v787_v6 }
 0x13e   :  { %v395_v9 = vpop.f32.mrf.mxu0 }
 0x13f   :  { %v396_v10 = vadd.f32 %v1393_v20, %v395_v9 }
 0x141   :  { %v501_v13 = vmax.f32 %v396_v10, 0.0  ;;  %v1229_v10 = vld [vmem:[%s1676_s0 + $0xd0] sm:$0xff] }
 0x142   :  { %v650_v14 = vpop.f32.mrf.mxu1  ;;  %1169 = vmatmul.msk.bf16.gmra.mxu2 %vm244_vm0, %v1229_v10 }
 0x143   :  { %v788_v15 = vmul.f32 %v1515_v11, %v650_v14  ;;  %v545_v16 = vpack.c.bf16 %v501_v13, %v500_v12  ;;  %v414_v13 = vadd.f32 %v1393_v20, %v413_v24  ;;  %v416_v14 = vadd.f32 %v1393_v20, %v415_v36  ;;  %v1230_v36 = vld [vmem:[%s1676_s0 + $0xd8] sm:$0xff] }
 0x145   :  { %v843_v17 = vadd.f32 %v842_v8, %v788_v15  ;;  %689 = vmatmul.bf16.gmra.mxu1 %v545_v16  ;;  %v425_v8 = vpop.f32.mrf.mxu2 }
 0x146   :  { %v398_v18 = vpop.f32.mrf.mxu0 }
 0x147   :  { %v399_v22 = vadd.f32 %v1393_v20, %v398_v18  ;;  %v844_v6 = vrot.slane %v843_v17, 4 }
 0x149   :  { %v502_v26 = vmax.f32 %v399_v22, 0.0  ;;  %v845_v9 = vadd.f32 %v844_v6, %v843_v17  ;;  %v509_v22 = vmax.f32 %v416_v14, 0.0 }
 0x14a   :  { %v652_v21 = vpop.f32.mrf.mxu1 }
 0x14b   :  { %v789_v29 = vmul.f32 %v1461_v33, %v652_v21  ;;  %v846_v16 = vrot.slane %v845_v9, 2  ;;  %v508_v21 = vmax.f32 %v414_v13, 0.0 }
 0x14d   :  { %v428_v19 = vpop.f32.mrf.mxu2  ;;  %v847_v17 = vadd.f32 %v846_v16, %v845_v9 }
 0x14e   :  { %v400_v23 = vpop.f32.mrf.mxu0  ;;  %v429_v6 = vadd.f32 %v1393_v20, %v428_v19 }
 0x14f   :  { %v401_v25 = vadd.f32 %v1393_v20, %v400_v23 }
 0x150   :  { %v514_v9 = vmax.f32 %v429_v6, 0.0 }
 0x151   :  { %v503_v27 = vmax.f32 %v401_v25, 0.0 }
 0x152   :  { %v655_v28 = vpop.f32.mrf.mxu1  ;;  %1170 = vmatmul.msk.bf16.gmra.mxu2 %vm244_vm0, %v1230_v36 }
 0x153   :  { %v546_v30 = vpack.c.bf16 %v503_v27, %v502_v26  ;;  %v790_v31 = vmul.f32 %v1466_v34, %v655_v28  ;;  %v549_v28 = vpack.c.bf16 %v509_v22, %v508_v21 }
 0x155   :  { %v850_v32 = vadd.f32 %v790_v31, %v789_v29  ;;  %694 = vmatmul.bf16.gmra.mxu1 %v546_v30  ;;  %v848_v29 = vrot.slane %v847_v17, 1  ;;  %v430_v24 = vpop.f32.mrf.mxu2 }
 0x156   :  { %v403_v35 = vpop.f32.mrf.mxu0 }
 0x157   :  { %v404_v40 = vadd.f32 %v1393_v20, %v403_v35 }
 0x159   :  { %v504_v46 = vmax.f32 %v404_v40, 0.0 }
 0x15a   :  { %v657_v38 = vpop.f32.mrf.mxu1 }
 0x15b   :  { %v791_v39 = vmul.f32 %v1479_v43, %v657_v38 }
 0x15d   :  { %v851_v41 = vadd.f32 %v850_v32, %v791_v39  ;;  %v849_v32 = vadd.f32 %v848_v29, %v847_v17 }
 0x15e   :  { %v405_v42 = vpop.f32.mrf.mxu0 }
 0x15f   :  { %v406_v45 = vadd.f32 %v1393_v20, %v405_v42 }
 0x161   :  { %v505_v47 = vmax.f32 %v406_v45, 0.0 }
 0x162   :  { %v660_v48 = vpop.f32.mrf.mxu1 }
 0x163   :  { %v547_v49 = vpack.c.bf16 %v505_v47, %v504_v46  ;;  %v792_v50 = vmul.f32 %v1485_v51, %v660_v48  ;;  %v433_v46 = vpop.f32.mrf.mxu2  ;;  %v510_v47 = vmax.f32 %v419_v37, 0.0 }
 0x165   :  { %v852_v52 = vadd.f32 %v851_v41, %v792_v50  ;;  %699 = vmatmul.bf16.gmra.mxu1 %v547_v49  ;;  %v421_v41 = vadd.f32 %v1393_v20, %v420_v54  ;;  %v426_v54 = vadd.f32 %v1393_v20, %v425_v8 }
 0x166   :  { %v408_v53 = vpop.f32.mrf.mxu0 }
 0x167   :  { %v409_v58 = vadd.f32 %v1393_v20, %v408_v53  ;;  %v511_v48 = vmax.f32 %v421_v41, 0.0 }
 0x169   :  { %v506_v0 = vmax.f32 %v409_v58, 0.0 }
 0x16a   :  { %v662_v56 = vpop.f32.mrf.mxu1 }
 0x16b   :  { %v793_v57 = vmul.f32 %v1497_v59, %v662_v56  ;;  %v435_v44 = vpop.f32.mrf.mxu2  ;;  %v424_v56 = vadd.f32 %v1393_v20, %v423_v62 }
 0x16c   :  { %v436_v17 = vadd.f32 %v1393_v20, %v435_v44 }
 0x16d   :  { %v853_v60 = vadd.f32 %v852_v52, %v793_v57  ;;  %v550_v52 = vpack.c.bf16 %v511_v48, %v510_v47 }
 0x16e   :  { %v410_v61 = vpop.f32.mrf.mxu0 }
 0x16f   :  { %v411_v63 = vadd.f32 %v1393_v20, %v410_v61  ;;  %v513_v61 = vmax.f32 %v426_v54, 0.0 }
 0x171   :  { %v507_v1 = vmax.f32 %v411_v63, 0.0 }
 0x172   :  { %v665_v2 = vpop.f32.mrf.mxu1 }
 0x173   :  { %v794_v4 = vmul.f32 %v1503_v3, %v665_v2  ;;  %v548_v5 = vpack.c.bf16 %v507_v1, %v506_v0  ;;  %v438_v0 = vpop.f32.mrf.mxu2 }
 0x175   :  { %v854_v7 = vadd.f32 %v853_v60, %v794_v4  ;;  %704 = vmatmul.bf16.vlgmr.msra.gmra.mxu3 %v548_v5  ;;  %v512_v60 = vmax.f32 %v424_v56, 0.0 }
 0x177   :  { %v551_v2 = vpack.c.bf16 %v513_v61, %v512_v60  ;;  %v949_v60 = vld [vmem:[%s1681_s5 + $0x78] sm:$0xff] }
 0x178   :  { %977 = vmatpush.msrb.mxu2 %v949_v60 }
 0x17a   :  { %v667_v12 = vpop.f32.mrf.mxu1 }
 0x17b   :  { %v795_v15 = vmul.f32 %v1515_v11, %v667_v12  ;;  %v440_v62 = vpop.f32.mrf.mxu2 }
 0x17c   :  { %v441_v36 = vadd.f32 %v1393_v20, %v440_v62 }
 0x17d   :  { %v855_v18 = vadd.f32 %v854_v7, %v795_v15  ;;  %v431_v7 = vadd.f32 %v1393_v20, %v430_v24 }
 0x17f   :  { %v856_v23 = vrot.slane %v855_v18, 4  ;;  %v515_v8 = vmax.f32 %v431_v7, 0.0 }
 0x181   :  { %v857_v25 = vadd.f32 %v856_v23, %v855_v18  ;;  %v552_v15 = vpack.c.bf16 %v515_v8, %v514_v9  ;;  %v434_v23 = vadd.f32 %v1393_v20, %v433_v46 }
 0x182   :  { %v670_v26 = vpop.f32.mrf.mxu1 }
 0x183   :  { %v858_v27 = vrot.slane %v857_v25, 2  ;;  %v796_v40 = vmul.f32 %v1461_v33, %v670_v26  ;;  %v443_v18 = vpop.f32.mrf.mxu2  ;;  %v516_v26 = vmax.f32 %v434_v23, 0.0 }
 0x185   :  { %v859_v30 = vadd.f32 %v858_v27, %v857_v25  ;;  %709 = vmatmul.bf16.gmra.mxu3 %v549_v28  ;;  %v517_v28 = vmax.f32 %v436_v17, 0.0 }
 0x187   :  { %v860_v31 = vrot.slane %v859_v30, 1 }
 0x189   :  { %v861_v35 = vadd.f32 %v860_v31, %v859_v30  ;;  %v553_v31 = vpack.c.bf16 %v517_v28, %v516_v26 }
 0x18a   :  { %v672_v38 = vpop.f32.mrf.mxu1 }
 0x18b   :  { %v963_v39 = vsel %vm962_vm1, %v861_v35, %v849_v32  ;;  %v797_v42 = vmul.f32 %v1466_v34, %v672_v38  ;;  %v445_v29 = vpop.f32.mrf.mxu2  ;;  %v439_v35 = vadd.f32 %v1393_v20, %v438_v0  ;;  %v519_v38 = vmax.f32 %v441_v36, 0.0 }
 0x18c   :  { %v446_v46 = vadd.f32 %v1393_v20, %v445_v29 }
 0x18d   :  { %v862_v45 = vadd.f32 %v797_v42, %v796_v40  ;;  %v518_v37 = vmax.f32 %v439_v35, 0.0 }
 0x18e   :  { %v521_v48 = vmax.f32 %v446_v46, 0.0 }
 0x18f   :  { %v554_v40 = vpack.c.bf16 %v519_v38, %v518_v37 }
 0x192   :  { %v675_v49 = vpop.f32.mrf.mxu1 }
 0x193   :  { %v798_v50 = vmul.f32 %v1479_v43, %v675_v49  ;;  %v448_v32 = vpop.f32.mrf.mxu2 }
 0x195   :  { %v863_v53 = vadd.f32 %v862_v45, %v798_v50  ;;  %714 = vmatmul.bf16.gmra.mxu3 %v550_v52  ;;  %v444_v45 = vadd.f32 %v1393_v20, %v443_v18 }
 0x19a   :  { %v677_v55 = vpop.f32.mrf.mxu1 }
 0x19b   :  { %v799_v57 = vmul.f32 %v1485_v51, %v677_v55  ;;  %v450_v41 = vpop.f32.mrf.mxu2 }
 0x19c   :  { %v451_v44 = vadd.f32 %v1393_v20, %v450_v41 }
 0x19d   :  { %v864_v58 = vadd.f32 %v863_v53, %v799_v57  ;;  %v449_v53 = vadd.f32 %v1393_v20, %v448_v32 }
 0x19e   :  { %v523_v54 = vmax.f32 %v451_v44, 0.0  ;;  %v946_v44 = vld [vmem:[%s1681_s5 + $0x60] sm:$0xff] }
 0x19f   :  { %v522_v56 = vmax.f32 %v449_v53, 0.0 }
 0x1a2   :  { %v680_v63 = vpop.f32.mrf.mxu1 }
 0x1a3   :  { %v800_v1 = vmul.f32 %v1497_v59, %v680_v63  ;;  %v453_v47 = vpop.f32.mrf.mxu2 }
 0x1a4   :  { %v454_v0 = vadd.f32 %v1393_v20, %v453_v47 }
 0x1a5   :  { %v865_v4 = vadd.f32 %v864_v58, %v800_v1  ;;  %719 = vmatmul.bf16.gmra.mxu3 %v551_v2  ;;  %v556_v58 = vpack.c.bf16 %v523_v54, %v522_v56  ;;  %v948_v2 = vld [vmem:[%s1681_s5 + $0x70] sm:$0xff] }
 0x1a6   :  { %978 = vmatpush.msrb.mxu2 %v948_v2  ;;  %v945_v2 = vld [vmem:[%s1681_s5 + $0x58] sm:$0xff] }
 0x1aa   :  { %v682_v5 = vpop.f32.mrf.mxu1 }
 0x1ab   :  { %v801_v10 = vmul.f32 %v1503_v3, %v682_v5  ;;  %v455_v52 = vpop.f32.mrf.mxu2  ;;  %v524_v5 = vmax.f32 %v454_v0, 0.0 }
 0x1ac   :  { %v456_v1 = vadd.f32 %v1393_v20, %v455_v52 }
 0x1ad   :  { %v866_v13 = vadd.f32 %v865_v4, %v801_v10 }
 0x1ae   :  { %v525_v6 = vmax.f32 %v456_v1, 0.0 }
 0x1b2   :  { %v685_v12 = vpop.f32.mrf.mxu1 }
 0x1b3   :  { %v802_v14 = vmul.f32 %v1515_v11, %v685_v12  ;;  %v458_v57 = vpop.f32.mrf.mxu2  ;;  %v557_v12 = vpack.c.bf16 %v525_v6, %v524_v5 }
 0x1b4   :  { %v459_v18 = vadd.f32 %v1393_v20, %v458_v57 }
 0x1b5   :  { %v867_v16 = vadd.f32 %v866_v13, %v802_v14  ;;  %724 = vmatmul.bf16.gmra.mxu3 %v552_v15 }
 0x1b7   :  { %v868_v21 = vrot.slane %v867_v16, 4 }
 0x1b9   :  { %v869_v22 = vadd.f32 %v868_v21, %v867_v16 }
 0x1ba   :  { %v687_v42 = vpop.f32.mrf.mxu1 }
 0x1bb   :  { %v870_v19 = vrot.slane %v869_v22, 2  ;;  %v460_v4 = vpop.f32.mrf.mxu2 }
 0x1bc   :  { %v461_v21 = vadd.f32 %v1393_v20, %v460_v4 }
 0x1bd   :  { %v871_v25 = vadd.f32 %v870_v19, %v869_v22  ;;  %v526_v19 = vmax.f32 %v459_v18, 0.0 }
 0x1be   :  { %v527_v17 = vmax.f32 %v461_v21, 0.0 }
 0x1bf   :  { %v872_v27 = vrot.slane %v871_v25, 1 }
 0x1c0   :  { %v558_v35 = vpack.c.bf16 %v527_v17, %v526_v19  ;;  %v944_v19 = vld [vmem:[%s1681_s5 + $0x50] sm:$0xff] }
 0x1c1   :  { %v873_v30 = vadd.f32 %v872_v27, %v871_v25  ;;  %v803_v25 = vmul.f32 %v1461_v33, %v687_v42  ;;  %v947_v42 = vld [vmem:[%s1681_s5 + $0x68] sm:$0xff] }
 0x1c2   :  { %v690_v49 = vpop.f32.mrf.mxu1  ;;  %979 = vmatpush.msrb.mxu2 %v947_v42 }
 0x1c3   :  { %v1568_v24 = vsel %vm964_vm2, %v873_v30, %v963_v39  ;;  %v520_v39 = vmax.f32 %v444_v45, 0.0  ;;  %v463_v13 = vpop.f32.mrf.mxu2  ;;  %v804_v23 = vmul.f32 %v1466_v34, %v690_v49 }
 0x1c4   :  { %980 = vmatpush.msrb.mxu2 %v946_v44 }
 0x1c5   :  { %729 = vmatmul.bf16.gmra.mxu3 %v553_v31  ;;  %v555_v50 = vpack.c.bf16 %v521_v48, %v520_v39  ;;  %v874_v30 = vadd.f32 %v804_v23, %v803_v25 }
 0x1c6   :  { %981 = vmatpush.msrb.mxu2 %v945_v2 }
 0x1c8   :  { %982 = vmatpush.msrb.mxu2 %v944_v19 }
 0x1ca   :  { %v692_v55 = vpop.f32.mrf.mxu1 }
 0x1cb   :  { %v805_v26 = vmul.f32 %v1479_v43, %v692_v55  ;;  %v465_v28 = vpop.f32.mrf.mxu2 }
 0x1cc   :  { %v466_v52 = vadd.f32 %v1393_v20, %v465_v28 }
 0x1cd   :  { %v875_v36 = vadd.f32 %v874_v30, %v805_v26 }
 0x1ce   :  { %v529_v54 = vmax.f32 %v466_v52, 0.0 }
 0x1d2   :  { %v695_v61 = vpop.f32.mrf.mxu1 }
 0x1d3   :  { %v806_v31 = vmul.f32 %v1485_v51, %v695_v61  ;;  %v468_v49 = vpop.f32.mrf.mxu2 }
 0x1d5   :  { %734 = vmatmul.bf16.gmra.mxu3 %v554_v40  ;;  %v876_v40 = vadd.f32 %v875_v36, %v806_v31 }
 0x1da   :  { %v697_v62 = vpop.f32.mrf.mxu1 }
 0x1db   :  { %v807_v37 = vmul.f32 %v1497_v59, %v697_v62  ;;  %v470_v1 = vpop.f32.mrf.mxu2 }
 0x1dc   :  { %v471_v62 = vadd.f32 %v1393_v20, %v470_v1 }
 0x1dd   :  { %v877_v45 = vadd.f32 %v876_v40, %v807_v37 }
 0x1e2   :  { %v700_v16 = vpop.f32.mrf.mxu1 }
 0x1e3   :  { %v808_v41 = vmul.f32 %v1503_v3, %v700_v16 }
 0x1e5   :  { %739 = vmatmul.bf16.gmra.mxu3 %v555_v50  ;;  %v878_v48 = vadd.f32 %v877_v45, %v808_v41  ;;  %v464_v50 = vadd.f32 %v1393_v20, %v463_v13 }
 0x1e7   :  { %v528_v56 = vmax.f32 %v464_v50, 0.0 }
 0x1ea   :  { %v702_v38 = vpop.f32.mrf.mxu1 }
 0x1eb   :  { %v809_v46 = vmul.f32 %v1515_v11, %v702_v38 }
 0x1ed   :  { %v879_v55 = vadd.f32 %v878_v48, %v809_v46  ;;  %v943_v48 = vld [vmem:[%s1681_s5 + $0x48] sm:$0xff] }
 0x1ee   :  { %983 = vmatpush.msrb.mxu2 %v943_v48 }
 0x1ef   :  { %v880_v57 = vrot.slane %v879_v55, 4 }
 0x1f1   :  { %v881_v0 = vadd.f32 %v880_v57, %v879_v55 }
 0x1f3   :  { %v882_v4 = vrot.slane %v881_v0, 2 }
 0x1f5   :  { %744 = vmatmul.bf16.gmra.mxu3 %v556_v58 }
 0x1f8   :  { %v705_v63 = vpop.f32.mrf.mxu3 }
 0x1f9   :  { %v810_v9 = vmul.f32 %v1461_v33, %v705_v63  ;;  %v559_v63 = vpack.c.bf16 %v529_v54, %v528_v56  ;;  %v941_v56 = vld [vmem:[%s1681_s5 + $0x38] sm:$0xff] }
 0x200   :  { %v707_v7 = vpop.f32.mrf.mxu3 }
 0x201   :  { %v811_v8 = vmul.f32 %v1466_v34, %v707_v7  ;;  %v469_v7 = vadd.f32 %v1393_v20, %v468_v49 }
 0x203   :  { %v886_v10 = vadd.f32 %v811_v8, %v810_v9  ;;  %v883_v8 = vadd.f32 %v882_v4, %v881_v0  ;;  %v530_v13 = vmax.f32 %v469_v7, 0.0 }
 0x205   :  { %749 = vmatmul.bf16.gmra.mxu3 %v557_v12  ;;  %v473_v12 = vpop.f32.mrf.mxu2  ;;  %v884_v16 = vrot.slane %v883_v8, 1 }
 0x207   :  { %v885_v17 = vadd.f32 %v884_v16, %v883_v8 }
 0x208   :  { %v710_v14 = vpop.f32.mrf.mxu3 }
 0x209   :  { %v812_v15 = vmul.f32 %v1479_v43, %v710_v14  ;;  %v531_v14 = vmax.f32 %v471_v62, 0.0 }
 0x20b   :  { %v887_v22 = vadd.f32 %v886_v10, %v812_v15 }
 0x210   :  { %v712_v27 = vpop.f32.mrf.mxu3 }
 0x211   :  { %v813_v29 = vmul.f32 %v1485_v51, %v712_v27  ;;  %v475_v27 = vpop.f32.mrf.mxu2 }
 0x212   :  { %v476_v36 = vadd.f32 %v1393_v20, %v475_v27 }
 0x213   :  { %v888_v32 = vadd.f32 %v887_v22, %v813_v29  ;;  %v560_v22 = vpack.c.bf16 %v531_v14, %v530_v13  ;;  %v967_v29 = vsel %vm966_vm3, %v885_v17, %v1568_v24  ;;  %v937_v17 = vld [vmem:[%s1681_s5 + $0x18] sm:$0xff] }
 0x214   :  { %v533_v40 = vmax.f32 %v476_v36, 0.0 }
 0x215   :  { %754 = vmatmul.bf16.gmra.mxu3 %v558_v35  ;;  %v474_v35 = vadd.f32 %v1393_v20, %v473_v12  ;;  %v942_v20 = vld [vmem:[%s1681_s5 + $0x40] sm:$0xff] }
 0x216   :  { %984 = vmatpush.msrb.mxu2 %v942_v20 }
 0x217   :  { %v532_v38 = vmax.f32 %v474_v35, 0.0 }
 0x218   :  { %v715_v47 = vpop.f32.mrf.mxu3  ;;  %985 = vmatpush.msrb.mxu2 %v941_v56 }
 0x219   :  { %v814_v39 = vmul.f32 %v1497_v59, %v715_v47  ;;  %v561_v45 = vpack.c.bf16 %v533_v40, %v532_v38 }
 0x21b   :  { %v889_v53 = vadd.f32 %v888_v32, %v814_v39 }
 0x220   :  { %v717_v58 = vpop.f32.mrf.mxu3 }
 0x221   :  { %v815_v60 = vmul.f32 %v1503_v3, %v717_v58 }
 0x223   :  { %v890_v61 = vadd.f32 %v889_v53, %v815_v60  ;;  %v940_v60 = vld [vmem:[%s1681_s5 + $0x30] sm:$0xff] }
 0x224   :  { %986 = vmatpush.msrb.mxu2 %v940_v60 }
 0x225   :  { %759 = vmatmul.bf16.gmra.mxu3 %v559_v63 }
 0x228   :  { %v720_v5 = vpop.f32.mrf.mxu3 }
 0x229   :  { %v816_v6 = vmul.f32 %v1515_v11, %v720_v5 }
 0x22b   :  { %v891_v9 = vadd.f32 %v890_v61, %v816_v6 }
 0x22d   :  { %v892_v10 = vrot.slane %v891_v9, 4 }
 0x22f   :  { %v893_v15 = vadd.f32 %v892_v10, %v891_v9  ;;  %v939_v10 = vld [vmem:[%s1681_s5 + $0x28] sm:$0xff] }
 0x230   :  { %v722_v18 = vpop.f32.mrf.mxu3  ;;  %987 = vmatpush.msrb.mxu2 %v939_v10 }
 0x231   :  { %v894_v21 = vrot.slane %v893_v15, 2  ;;  %v817_v30 = vmul.f32 %v1461_v33, %v722_v18 }
 0x233   :  { %v895_v23 = vadd.f32 %v894_v21, %v893_v15  ;;  %v938_v21 = vld [vmem:[%s1681_s5 + $0x20] sm:$0xff] }
 0x234   :  { %988 = vmatpush.msrb.mxu2 %v938_v21 }
 0x235   :  { %v896_v25 = vrot.slane %v895_v23, 1  ;;  %764 = vmatmul.bf16.gmra.mxu3 %v560_v22 }
 0x236   :  { %989 = vmatpush.msrb.mxu2 %v937_v17 }
 0x237   :  { %v897_v26 = vadd.f32 %v896_v25, %v895_v23 }
 0x238   :  { %v725_v28 = vpop.f32.mrf.mxu3 }
 0x239   :  { %v818_v31 = vmul.f32 %v1466_v34, %v725_v28  ;;  %v969_v32 = vsel %vm968_vm4, %v897_v26, %v967_v29 }
 0x23b   :  { %v898_v37 = vadd.f32 %v818_v31, %v817_v30  ;;  %v936_v31 = vld [vmem:[%s1681_s5 + $0x10] sm:$0xff] }
 0x23c   :  { %990 = vmatpush.msrb.mxu2 %v936_v31 }
 0x240   :  { %v727_v41 = vpop.f32.mrf.mxu3 }
 0x241   :  { %v819_v42 = vmul.f32 %v1479_v43, %v727_v41 }
 0x243   :  { %v899_v46 = vadd.f32 %v898_v37, %v819_v42 }
 0x245   :  { %769 = vmatmul.bf16.gmra.mxu3 %v561_v45 }
 0x248   :  { %v730_v47 = vpop.f32.mrf.mxu3 }
 0x249   :  { %v820_v24 = vmul.f32 %v1485_v51, %v730_v47 }
 0x24b   :  { %v900_v39 = vadd.f32 %v899_v46, %v820_v24  ;;  %v935_v46 = vld [vmem:[%s1681_s5 + $0x8] sm:$0xff] }
 0x24c   :  { %991 = vmatpush.msrb.mxu2 %v935_v46 }
 0x250   :  { %v732_v49 = vpop.f32.mrf.mxu3 }
 0x251   :  { %v821_v50 = vmul.f32 %v1497_v59, %v732_v49 }
 0x253   :  { %v901_v52 = vadd.f32 %v900_v39, %v821_v50  ;;  %v934_v39 = vld [vmem:[%s1681_s5] sm:$0xff] }
 0x254   :  { %992 = vmatpush.msrb.mxu2 %v934_v39 }
 0x258   :  { %v735_v53 = vpop.f32.mrf.mxu3 }
 0x259   :  { %v822_v44 = vmul.f32 %v1503_v3, %v735_v53 }
 0x25b   :  { %v902_v55 = vadd.f32 %v901_v52, %v822_v44 }
 0x260   :  { %v737_v54 = vpop.f32.mrf.mxu3 }
 0x261   :  { %v823_v57 = vmul.f32 %v1515_v11, %v737_v54 }
 0x263   :  { %v903_v58 = vadd.f32 %v902_v55, %v823_v57 }
 0x265   :  { %v904_v61 = vrot.slane %v903_v58, 4 }
 0x267   :  { %v905_v63 = vadd.f32 %v904_v61, %v903_v58 }
 0x268   :  { %v740_v0 = vpop.f32.mrf.mxu3 }
 0x269   :  { %v906_v1 = vrot.slane %v905_v63, 2  ;;  %v824_v7 = vmul.f32 %v1461_v33, %v740_v0 }
 0x26b   :  { %v907_v2 = vadd.f32 %v906_v1, %v905_v63 }
 0x26d   :  { %v908_v4 = vrot.slane %v907_v2, 1 }
 0x26f   :  { %v909_v5 = vadd.f32 %v908_v4, %v907_v2 }
 0x270   :  { %v742_v6 = vpop.f32.mrf.mxu3 }
 0x271   :  { %v825_v62 = vmul.f32 %v1466_v34, %v742_v6  ;;  %v971_v9 = vsel %vm970_vm5, %v909_v5, %v969_v32 }
 0x273   :  { %v910_v8 = vadd.f32 %v825_v62, %v824_v7 }
 0x278   :  { %v745_v12 = vpop.f32.mrf.mxu3 }
 0x279   :  { %v826_v13 = vmul.f32 %v1479_v43, %v745_v12 }
 0x27b   :  { %v911_v14 = vadd.f32 %v910_v8, %v826_v13 }
 0x280   :  { %v747_v15 = vpop.f32.mrf.mxu3 }
 0x281   :  { %v827_v16 = vmul.f32 %v1485_v51, %v747_v15 }
 0x283   :  { %v912_v18 = vadd.f32 %v911_v14, %v827_v16 }
 0x288   :  { %v750_v22 = vpop.f32.mrf.mxu3 }
 0x289   :  { %v828_v23 = vmul.f32 %v1497_v59, %v750_v22 }
 0x28b   :  { %v913_v19 = vadd.f32 %v912_v18, %v828_v23 }
 0x290   :  { %v752_v25 = vpop.f32.mrf.mxu3 }
 0x291   :  { %v829_v26 = vmul.f32 %v1503_v3, %v752_v25 }
 0x293   :  { %v914_v28 = vadd.f32 %v913_v19, %v829_v26 }
 0x298   :  { %v755_v27 = vpop.f32.mrf.mxu3 }
 0x299   :  { %v830_v29 = vmul.f32 %v1515_v11, %v755_v27 }
 0x29b   :  { %v915_v30 = vadd.f32 %v914_v28, %v830_v29 }
 0x29d   :  { %v916_v32 = vrot.slane %v915_v30, 4 }
 0x29f   :  { %v917_v35 = vadd.f32 %v916_v32, %v915_v30 }
 0x2a0   :  { %v757_v36 = vpop.f32.mrf.mxu3 }
 0x2a1   :  { %v918_v37 = vrot.slane %v917_v35, 2  ;;  %v831_v49 = vmul.f32 %v1461_v33, %v757_v36 }
 0x2a3   :  { %v919_v38 = vadd.f32 %v918_v37, %v917_v35 }
 0x2a5   :  { %v920_v40 = vrot.slane %v919_v38, 1 }
 0x2a7   :  { %v921_v41 = vadd.f32 %v920_v40, %v919_v38 }
 0x2a8   :  { %v760_v42 = vpop.f32.mrf.mxu3 }
 0x2a9   :  { %v973_v45 = vsel %vm972_vm6, %v921_v41, %v971_v9  ;;  %v832_v20 = vmul.f32 %v1466_v34, %v760_v42 }
 0x2ab   :  { %v922_v53 = vadd.f32 %v832_v20, %v831_v49 }
 0x2b0   :  { %v762_v47 = vpop.f32.mrf.mxu3 }
 0x2b1   :  { %v833_v50 = vmul.f32 %v1479_v43, %v762_v47 }
 0x2b3   :  { %v923_v55 = vadd.f32 %v922_v53, %v833_v50 }
 0x2b8   :  { %v765_v24 = vpop.f32.mrf.mxu3 }
 0x2b9   :  { %v834_v44 = vmul.f32 %v1485_v51, %v765_v24 }
 0x2bb   :  { %v924_v54 = vadd.f32 %v923_v55, %v834_v44 }
 0x2c0   :  { %v767_v48 = vpop.f32.mrf.mxu3 }
 0x2c1   :  { %v835_v56 = vmul.f32 %v1497_v59, %v767_v48  ;;  %v1253_v59 = vld [vmem:[%s1682_s6] ss:$0 sm:$0xff] }
 0x2c3   :  { %v925_v58 = vadd.f32 %v924_v54, %v835_v56 }
 0x2c8   :  { %v770_v52 = vpop.f32.mrf.mxu3 }
 0x2c9   :  { %v836_v57 = vmul.f32 %v1503_v3, %v770_v52 }
 0x2cb   :  { %v926_v61 = vadd.f32 %v925_v58, %v836_v57 }
 0x2d0   :  { %v772_v60 = vpop.f32.mrf.mxu3 }
 0x2d1   :  { %v837_v63 = vmul.f32 %v1515_v11, %v772_v60 }
 0x2d3   :  { %v927_v34 = vadd.f32 %v926_v61, %v837_v63 }
 0x2d5   :  { %v928_v0 = vrot.slane %v927_v34, 4 }
 0x2d7   :  { %v929_v33 = vadd.f32 %v928_v0, %v927_v34 }
 0x2d9   :  { %v930_v1 = vrot.slane %v929_v33, 2 }
 0x2db   :  { %v931_v43 = vadd.f32 %v930_v1, %v929_v33 }
 0x2dd   :  { %v932_v2 = vrot.slane %v931_v43, 1 }
 0x2df   :  { %v933_v4 = vadd.f32 %v932_v2, %v931_v43 }
 0x2e1   :  { %v975_v51 = vsel %vm974_vm7, %v933_v4, %v973_v45 }
 0x2e2   :  { %993 = vmatmul.f32.vlgmr.msrb.gmra.mxu2 %v975_v51 }
 0x365   :  { %v994_v3 = vpop.f32.mrf.mxu2 }
 0x366   :  { %v995_v5 = vadd.f32 %v1253_v59, %v994_v3 }
 0x368   :  { %997 = vmax.xlane.f32.xlu0 %v995_v5 }
 0x3db   :  { %v998_v6 = vpop.xlane.xlu0 %997 }
 0x3dc   :  { %v999_v7 = vsub.f32 %v995_v5, %v998_v6 }
 0x3de   :  { %v1000_v11 = vmul.f32 1.442695, %v999_v7 }
 0x3e0   :  { %1254 = vpow2.f32 %v1000_v11 }
 0x3e6   :  { %v1255_v62 = vpop.eup %1254 }
 0x3e7   :  { %1002 = vadd.xlane.f32.xlu0 %v1255_v62 }
 0x45a   :  { %v1003_v9 = vpop.xlane.xlu0 %1002 }
 0x45b   :  { %1256 = vrcp.f32 %v1003_v9 }
 0x461   :  { %v1257_v8 = vpop.eup %1256 }
 0x462   :  { %v1005_v10 = vmul.f32 %v1257_v8, %v1255_v62 }
 0x464   :  { %1006 = vst [vmem:[#allocation2] sm:$0xff] %v1005_v10 }
 0x465   :  { %1017 = dma.vmem_to_hbm [thread:$0]  %s1013_s18, 128, %s1015_s21, [#allocation3]  }
 0x466   :  { %1282 = dma.done.wait [#allocation3], 128  }
 0x467   :  { %1283 = vsyncadd [#allocation3], 4294967168 }
 0x468   :  { %1022 = vsyncpa [#allocation3], 1 }

</bundles_post_ra>
